<compile_context>
chip_gen: v7x
topology: tpu7x:2x2x1
jax: 0.10.0
libtpu: 0.0.40
codegen_flags: <defaults>
</compile_context>

<pallas_src>
import jax
import jax.numpy as jnp
from jax.experimental import pallas as pl
from jax.experimental.pallas import tpu as pltpu

K_HOPS = 2


def _round_up(x, m):
    return (x + m - 1) // m * m


def _hop_kernel(adj_ref, dinv2_ref, h_ref, o_ref, acc_ref):
    """Intermediate SGC hop: o = D^{-1} (B @ h), with B = A + I stored as int8."""
    k = pl.program_id(1)

    @pl.when(k == 0)
    def _():
        acc_ref[...] = jnp.zeros_like(acc_ref)

    # int8 -> bf16 upcast on the VPU (cheap filler under MXU/DMA); adjacency
    # values are small integer counts, exactly representable in bf16.
    a = adj_ref[...].astype(jnp.float32).astype(jnp.bfloat16)
    acc_ref[...] += jnp.dot(a, h_ref[...], preferred_element_type=jnp.float32)

    @pl.when(k == pl.num_programs(1) - 1)
    def _():
        # Fold the inter-hop D^{-1} row scaling into the write-back (O(tm*F)).
        o_ref[...] = (dinv2_ref[...] * acc_ref[...]).astype(o_ref.dtype)


def _final_kernel(adj_ref, dinv_ref, h_ref, w_ref, b_ref, o_ref, acc_ref):
    """Last hop fused with the D^{-1/2} row scaling, linear layer and log_softmax."""
    k = pl.program_id(1)

    @pl.when(k == 0)
    def _():
        acc_ref[...] = jnp.zeros_like(acc_ref)

    a = adj_ref[...].astype(jnp.float32).astype(jnp.bfloat16)
    acc_ref[...] += jnp.dot(a, h_ref[...], preferred_element_type=jnp.float32)

    @pl.when(k == pl.num_programs(1) - 1)
    def _():
        h_fin = (dinv_ref[...] * acc_ref[...]).astype(jnp.bfloat16)
        # logits = H @ W + b; padded class columns carry b = -1e30 so their exp
        # underflows to exactly 0 and they drop out of the softmax.
        # NOTE: keep this epilogue in f32 (the -1e30 trick overflows in bf16).
        logits = jnp.dot(h_fin, w_ref[...],
                         preferred_element_type=jnp.float32) + b_ref[...]
        m = jnp.max(logits, axis=-1, keepdims=True)                 # lane-axis (XLU)
        z = logits - m
        lse = jnp.log(jnp.sum(jnp.exp(z), axis=-1, keepdims=True))  # exp/log on EUP
        o_ref[...] = (z - lse).astype(o_ref.dtype)


def sgcnet_forward(x, edge_index, weight, bias, k_hops=K_HOPS):
    """x: [N, F] f32, edge_index: [2, E] int32, weight: [C, F] f32, bias: [C] f32.

    Returns [N, C] f32 log-probabilities.
    """
    n, f = x.shape
    c = weight.shape[0]

    # ---- glue: degree vector straight from the edge list (O(E), no N^2 pass) ----
    # add_remaining_self_loops semantics: explicit self-loop edges are replaced
    # by exactly one unit self-loop per node on the diagonal.
    src, dst = edge_index[0], edge_index[1]
    not_self = src != dst
    deg = jnp.ones((n,), jnp.float32).at[dst].add(not_self.astype(jnp.float32))
    dinv = 1.0 / jnp.sqrt(deg)  # deg >= 1 because of the self loop

    # ---- padding / tile selection (lane-dense: trailing dims multiples of 128) ----
    f_pad = _round_up(f, 128)
    c_pad = _round_up(c, 128)
    n_pad = _round_up(n, 128)
    if n_pad <= 1024:
        # >= 2 row tiles whenever possible so both v7x TensorCores get work.
        tm = n_pad if n_pad == 128 else n_pad // 2
        tk = n_pad                           # single reduction step
    else:
        n_pad = _round_up(n, 512)
        tm = 256
        if n_pad % 2048 == 0:
            tk = 2048
        elif n_pad % 1024 == 0:
            tk = 1024
        else:
            tk = 512

    # ---- build B = A + I once, directly at padded shape, as int8 (1 B/entry) ----
    adj_p = jnp.zeros((n_pad, n_pad), jnp.int8).at[dst, src].add(
        not_self.astype(jnp.int8))
    diag = jnp.arange(n)
    adj_p = adj_p.at[diag, diag].add(jnp.ones((n,), jnp.int8))

    dinv_p = jnp.zeros((n_pad,), jnp.float32).at[:n].set(dinv)
    dinv_col = dinv_p.reshape(n_pad, 1)               # D^{-1/2}: final epilogue
    dinv2_col = (dinv_p * dinv_p).reshape(n_pad, 1)   # D^{-1}:   inter-hop epilogue

    # H0 = D^{-1/2} X, pre-scaled once; bf16 MXU operand.
    h = jnp.zeros((n_pad, f_pad), jnp.bfloat16).at[:n, :f].set(
        (dinv[:, None] * x).astype(jnp.bfloat16))
    w_p = jnp.zeros((f_pad, c_pad), jnp.bfloat16).at[:f, :c].set(
        weight.T.astype(jnp.bfloat16))
    b_p = jnp.full((1, c_pad), -1e30, jnp.float32).at[0, :c].set(
        bias.astype(jnp.float32))

    grid = (n_pad // tm, n_pad // tk)                  # (row tiles, reduction LAST)
    adj_spec = pl.BlockSpec((tm, tk), lambda i, k: (i, k))
    dv_spec = pl.BlockSpec((tm, 1), lambda i, k: (i, 0))
    h_spec = pl.BlockSpec((tk, f_pad), lambda i, k: (k, 0))
    hout_spec = pl.BlockSpec((tm, f_pad), lambda i, k: (i, 0))
    w_spec = pl.BlockSpec((f_pad, c_pad), lambda i, k: (0, 0))
    b_spec = pl.BlockSpec((1, c_pad), lambda i, k: (0, 0))
    out_spec = pl.BlockSpec((tm, c_pad), lambda i, k: (i, 0))

    # VMEM working-set estimate (double-buffered inputs/outputs + scratch),
    # clamped to <= 48 MiB so it is safe under v7x's 64 MiB VMEM ceiling.
    vmem_est = (2 * tm * tk                  # adj (int8)
                + 2 * tk * f_pad * 2         # h in (bf16)
                + 2 * tm * f_pad * 2         # h out (bf16)
                + tm * f_pad * 4             # f32 accumulator
                + 2 * tm * 128 * 4           # dinv column (lane-padded)
                + 2 * f_pad * c_pad * 2      # weights (final call)
                + 2 * tm * c_pad * 4         # logits out (final call)
                + 2 * 8 * c_pad * 4)         # bias
    vmem_limit = min(48 * 1024 * 1024, max(32 * 1024 * 1024, int(1.5 * vmem_est)))
    cparams = pltpu.CompilerParams(
        dimension_semantics=("parallel", "arbitrary"),
        vmem_limit_bytes=vmem_limit,
    )

    hop_cost = pl.CostEstimate(
        flops=2 * n_pad * n_pad * f_pad,
        transcendentals=0,
        bytes_accessed=n_pad * n_pad + 4 * n_pad * f_pad + 4 * n_pad)
    final_cost = pl.CostEstimate(
        flops=2 * n_pad * n_pad * f_pad + 2 * n_pad * f_pad * c_pad,
        transcendentals=n_pad * c_pad,
        bytes_accessed=(n_pad * n_pad + 2 * n_pad * f_pad
                        + 4 * n_pad * c_pad + 2 * f_pad * c_pad))

    # K-1 propagation hops, ping-ponged through HBM in bf16.
    for _ in range(k_hops - 1):
        h = pl.pallas_call(
            _hop_kernel,
            out_shape=jax.ShapeDtypeStruct((n_pad, f_pad), jnp.bfloat16),
            grid_spec=pltpu.PrefetchScalarGridSpec(
                num_scalar_prefetch=0,
                grid=grid,
                in_specs=[adj_spec, dv_spec, h_spec],
                out_specs=hout_spec,
                scratch_shapes=[pltpu.VMEM((tm, f_pad), jnp.float32)],
            ),
            compiler_params=cparams,
            cost_estimate=hop_cost,
        )(adj_p, dinv2_col, h)

    # Final hop fused with the D^{-1/2} scaling, linear layer + log_softmax.
    out = pl.pallas_call(
        _final_kernel,
        out_shape=jax.ShapeDtypeStruct((n_pad, c_pad), jnp.float32),
        grid_spec=pltpu.PrefetchScalarGridSpec(
            num_scalar_prefetch=0,
            grid=grid,
            in_specs=[adj_spec, dv_spec, h_spec, w_spec, b_spec],
            out_specs=out_spec,
            scratch_shapes=[pltpu.VMEM((tm, f_pad), jnp.float32)],
        ),
        compiler_params=cparams,
        cost_estimate=final_cost,
    )(adj_p, dinv_col, h, w_p, b_p)

    return out[:n, :c]


def sgcnet_reference(x, edge_index, weight, bias, k_hops=K_HOPS):
    """Pure-JAX f32 reference for validation."""
    n = x.shape[0]
    src, dst = edge_index[0], edge_index[1]
    not_self = (src != dst).astype(jnp.float32)
    adj = jnp.zeros((n, n), jnp.float32).at[dst, src].add(not_self)
    adj = adj + jnp.eye(n, dtype=jnp.float32)
    deg = jnp.sum(adj, axis=1)
    dinv = jnp.where(deg > 0, 1.0 / jnp.sqrt(deg), 0.0)
    a_hat = dinv[:, None] * adj * dinv[None, :]
    h = x
    for _ in range(k_hops):
        h = a_hat @ h
    logits = h @ weight.T + bias[None, :]
    m = jnp.max(logits, axis=1, keepdims=True)
    z = logits - m
    return z - jnp.log(jnp.sum(jnp.exp(z), axis=1, keepdims=True))


if __name__ == "__main__":
    key = jax.random.PRNGKey(0)
    k_x, k_e, k_w, k_b = jax.random.split(key, 4)

    num_nodes = 16
    num_features = 8
    num_classes = 4
    num_edges = 32

    x = jax.random.normal(k_x, (num_nodes, num_features), dtype=jnp.float32)
    edge_index = jax.random.randint(k_e, (2, num_edges), 0, num_nodes,
                                    dtype=jnp.int32)

    # PyTorch nn.Linear shapes: W [C, F], b [C].
    bound = 1.0 / jnp.sqrt(jnp.float32(num_features))
    weight = jax.random.uniform(k_w, (num_classes, num_features),
                                minval=-bound, maxval=bound, dtype=jnp.float32)
    bias = jax.random.uniform(k_b, (num_classes,),
                              minval=-bound, maxval=bound, dtype=jnp.float32)

    out = sgcnet_forward(x, edge_index, weight, bias)
    out = jax.block_until_ready(out)

    assert out.shape == (num_nodes, num_classes)
    # rows of exp(log_softmax) must sum to 1
    row_sums = jnp.sum(jnp.exp(out), axis=1)
    assert jnp.allclose(row_sums, jnp.ones(num_nodes), atol=1e-4)
    # match the pure-JAX f32 reference (bf16 MXU inputs -> loose tolerance)
    ref = sgcnet_reference(x, edge_index, weight, bias)
    assert jnp.allclose(out, ref, atol=7.5e-2), float(jnp.max(jnp.abs(out - ref)))

    print("KERNEL_OK")
</pallas_src>

<mosaic_0001>
module attributes {stable_mosaic.version = 11 : i64} {
  func.func @_hop_kernel(%arg0: i32, %arg1: i32, %arg2: memref<128x128xi8, #tpu.memory_space<vmem>>, %arg3: memref<128x1xf32, #tpu.memory_space<vmem>>, %arg4: memref<128x128xbf16, #tpu.memory_space<vmem>>, %arg5: memref<128x128xbf16, #tpu.memory_space<vmem>>, %arg6: memref<128x128xf32, #tpu.memory_space<vmem>>) attributes {dimension_semantics = [#tpu.dimension_semantics<parallel>, #tpu.dimension_semantics<arbitrary>], iteration_bounds = array<i64: 1, 1>, scalar_prefetch = 0 : i64, scratch_operands = 1 : i64, tpu.core_type = #tpu.core_type<tc>, window_params = [{transform_indices = @transform_0, window_bounds = array<i64: 128, 128>}, {transform_indices = @transform_1, window_bounds = array<i64: 128, 1>}, {transform_indices = @transform_2, window_bounds = array<i64: 128, 128>}, {transform_indices = @transform_3, window_bounds = array<i64: 128, 128>}]} {
    %c0_i32 = arith.constant 0 : i32
    %0 = arith.cmpi eq, %arg1, %c0_i32 : i32
    %1 = arith.extui %0 : i1 to i32
    %c0_i32_0 = arith.constant 0 : i32
    %2 = arith.cmpi ne, %1, %c0_i32_0 : i32
    scf.if %2 {
      %cst_10 = arith.constant 0.000000e+00 : f32
      %14 = vector.broadcast %cst_10 : f32 to vector<128x128xf32>
      %c0_11 = arith.constant 0 : index
      %c0_12 = arith.constant 0 : index
      %15 = vector.load %arg6[%c0_11, %c0_12] : memref<128x128xf32, #tpu.memory_space<vmem>>, vector<128x128xf32>
      tpu.vector_store %arg6[%c0_11, %c0_12], %14 {strides = array<i32>} : memref<128x128xf32, #tpu.memory_space<vmem>>, vector<128x128xf32>,
    } else {
    }
    %c0 = arith.constant 0 : index
    %c0_1 = arith.constant 0 : index
    %3 = vector.load %arg2[%c0, %c0_1] : memref<128x128xi8, #tpu.memory_space<vmem>>, vector<128x128xi8>
    %4 = arith.sitofp %3 : vector<128x128xi8> to vector<128x128xf32>
    %5 = arith.truncf %4 : vector<128x128xf32> to vector<128x128xbf16>
    %c0_2 = arith.constant 0 : index
    %c0_3 = arith.constant 0 : index
    %6 = vector.load %arg6[%c0_2, %c0_3] : memref<128x128xf32, #tpu.memory_space<vmem>>, vector<128x128xf32>
    %c0_4 = arith.constant 0 : index
    %c0_5 = arith.constant 0 : index
    %7 = vector.load %arg4[%c0_4, %c0_5] : memref<128x128xbf16, #tpu.memory_space<vmem>>, vector<128x128xbf16>
    %cst = arith.constant dense<0.000000e+00> : vector<128x128xf32>
    %8 = tpu.matmul %5, %7, %cst {dimension_numbers = #tpu.dot_dimension_numbers<[1], [0], [0], [1], [0, 0, 1, 1], [], []>} : vector<128x128xbf16>, vector<128x128xbf16>, vector<128x128xf32> -> vector<128x128xf32>
    %9 = arith.addf %6, %8 : vector<128x128xf32>
    %c0_6 = arith.constant 0 : index
    %c0_7 = arith.constant 0 : index
    %10 = vector.load %arg6[%c0_6, %c0_7] : memref<128x128xf32, #tpu.memory_space<vmem>>, vector<128x128xf32>
    tpu.vector_store %arg6[%c0_6, %c0_7], %9 {strides = array<i32>} : memref<128x128xf32, #tpu.memory_space<vmem>>, vector<128x128xf32>,
    %c0_i32_8 = arith.constant 0 : i32
    %11 = arith.cmpi eq, %arg1, %c0_i32_8 : i32
    %12 = arith.extui %11 : i1 to i32
    %c0_i32_9 = arith.constant 0 : i32
    %13 = arith.cmpi ne, %12, %c0_i32_9 : i32
    scf.if %13 {
      %c0_10 = arith.constant 0 : index
      %c0_11 = arith.constant 0 : index
      %14 = vector.load %arg3[%c0_10, %c0_11] : memref<128x1xf32, #tpu.memory_space<vmem>>, vector<128x1xf32>
      %c0_12 = arith.constant 0 : index
      %c0_13 = arith.constant 0 : index
      %15 = vector.load %arg6[%c0_12, %c0_13] : memref<128x128xf32, #tpu.memory_space<vmem>>, vector<128x128xf32>
      %16 = vector.broadcast %14 : vector<128x1xf32> to vector<128x128xf32>
      %17 = arith.mulf %16, %15 : vector<128x128xf32>
      %18 = arith.truncf %17 : vector<128x128xf32> to vector<128x128xbf16>
      %c0_14 = arith.constant 0 : index
      %c0_15 = arith.constant 0 : index
      %19 = vector.load %arg5[%c0_14, %c0_15] : memref<128x128xbf16, #tpu.memory_space<vmem>>, vector<128x128xbf16>
      tpu.vector_store %arg5[%c0_14, %c0_15], %18 {strides = array<i32>} : memref<128x128xbf16, #tpu.memory_space<vmem>>, vector<128x128xbf16>,
    } else {
    }
    return
  }
  func.func @transform_0(%arg0: i32, %arg1: i32) -> (i32, i32) {
    %c0_i32 = arith.constant 0 : i32
    return %arg0, %arg1 : i32, i32
  }
  func.func @transform_1(%arg0: i32, %arg1: i32) -> (i32, i32) {
    %c0_i32 = arith.constant 0 : i32
    %c0_i32_0 = arith.constant 0 : i32
    return %arg0, %c0_i32 : i32, i32
  }
  func.func @transform_2(%arg0: i32, %arg1: i32) -> (i32, i32) {
    %c0_i32 = arith.constant 0 : i32
    %c0_i32_0 = arith.constant 0 : i32
    return %arg1, %c0_i32 : i32, i32
  }
  func.func @transform_3(%arg0: i32, %arg1: i32) -> (i32, i32) {
    %c0_i32 = arith.constant 0 : i32
    %c0_i32_0 = arith.constant 0 : i32
    return %arg0, %c0_i32 : i32, i32
  }
}

</mosaic_0001>

<bundles_post_ra>
// kernel: tpu_custom_call.1
= control target key start
LH: loop header
LB: loop body
LE: loop exit
PB: predicated region body
PF: predicated region fallthrough
CT: control target
= control target key end

     0   :  { %v673_v2 = vmov 0   ;;  %s801_s0 = inlined_call_operand.vmem [shape: s8[128,128], index: 0, kind: input, shape index: {}]   ;;  %s802_s1 = inlined_call_operand.vmem [shape: f32[128,1], index: 1, kind: input, shape index: {}]   ;;  %s803_s2 = inlined_call_operand.vmem [shape: bf16[128,128], index: 2, kind: input, shape index: {}]   ;;  %s804_s3 = inlined_call_operand.hbm [shape: bf16[128,128], index: 3, kind: output, shape index: {}]  }
   0x1   :  { %v641_v0 = vld [vmem:[%s803_s2] sm:$0xff]   ;;  %v642_v1 = vld [vmem:[%s803_s2 + $0x8] sm:$0xff]   ;;  %640 = vset.pattern.permute.xlu1 %v673_v2  ;;  %639 = vset.pattern.permute.xlu0 %v673_v2  ;;  %v643_v3 = vld [vmem:[%s803_s2 + $0x10] sm:$0xff]  }
   0x2   :  { %587 = vmatprep.subr.bf16.mxu0 %v641_v0  ;;  %619 = vmatprep.subr.bf16.mxu1 %v641_v0  ;;  %v644_v4 = vld [vmem:[%s803_s2 + $0x18] sm:$0xff]   ;;  %v712_v5 = vld [vmem:[%s801_s0] sm:$0xff]  ;;  %v717_v6 = vld [vmem:[%s801_s0 + $0x10] sm:$0xff] }
   0x3   :  { %588 = vmatpush3.bf16.msra.mxu0 %v641_v0  ;;  %627 = vmatpush3.bf16.msra.mxu1 %v641_v0  ;;  %v40_v7 = vunpack.c.l.s8.bf16 %v712_v5  ;;  %v44_v8 = vunpack.c.l.s8.bf16 %v717_v6  ;;  %v262_v9 = vld [vmem:[%s802_s1 + $0x10] sm:$0xff]  ;;  %v260_v10 = vld [vmem:[%s802_s1] sm:$0xff]  ;;  %v263_v11 = vld [vmem:[%s802_s1 + $0x18] sm:$0xff] }
   0x4   :  { %589 = vmatprep.subr.bf16.mxu0 %v642_v1  ;;  %620 = vmatprep.subr.bf16.mxu1 %v642_v1  ;;  %v261_v12 = vld [vmem:[%s802_s1 + $0x8] sm:$0xff]  ;;  %v645_v13 = vld [vmem:[%s803_s2 + $0x20] sm:$0xff]  }
   0x5   :  { %304 = vperm.xlu1 %640, %v262_v9   ;;  %294 = vperm.xlu0 %639, %v260_v10  }
   0x6   :  { %603 = vmatprep.mubr.bf16.mxu0 %v40_v7  ;;  %611 = vmatprep.mubr.bf16.mxu1 %v44_v8 }
   0x7   :  { %590 = vmatpush3.bf16.msra.mxu0 %v642_v1  ;;  %628 = vmatpush3.bf16.msra.mxu1 %v642_v1 }
   0x8   :  { %591 = vmatprep.subr.bf16.mxu0 %v643_v3  ;;  %621 = vmatprep.subr.bf16.mxu1 %v643_v3 }
   0x9   :  { %309 = vperm.xlu1 %640, %v263_v11   ;;  %299 = vperm.xlu0 %639, %v261_v12  }
   0xb   :  { %592 = vmatpush3.bf16.msra.mxu0 %v643_v3  ;;  %629 = vmatpush3.bf16.msra.mxu1 %v643_v3 }
   0xc   :  { %593 = vmatprep.subr.bf16.mxu0 %v644_v4  ;;  %622 = vmatprep.subr.bf16.mxu1 %v644_v4 }
   0xd   :  { %8 = vsyncpa [#allocation4], 0  ;;  %v265_v14 = vld [vmem:[%s802_s1 + $0x28] sm:$0xff]  ;;  %v264_v15 = vld [vmem:[%s802_s1 + $0x20] sm:$0xff]  ;;  %v41_v27 = vunpack.c.h.s8.bf16 %v712_v5  ;;  %v45_v28 = vunpack.c.h.s8.bf16 %v717_v6 }
   0xe   :  { %v646_v16 = vld [vmem:[%s803_s2 + $0x28] sm:$0xff]   ;;  %319 = vperm.xlu1 %640, %v265_v14   ;;  %314 = vperm.xlu0 %639, %v264_v15   ;;  %v267_v17 = vld [vmem:[%s802_s1 + $0x38] sm:$0xff]  ;;  %v266_v18 = vld [vmem:[%s802_s1 + $0x30] sm:$0xff] }
   0xf   :  { %594 = vmatpush3.bf16.msra.mxu0 %v644_v4  ;;  %630 = vmatpush3.bf16.msra.mxu1 %v644_v4  ;;  %v647_v19 = vld [vmem:[%s803_s2 + $0x30] sm:$0xff]   ;;  %v269_v20 = vld [vmem:[%s802_s1 + $0x48] sm:$0xff]  ;;  %v268_v21 = vld [vmem:[%s802_s1 + $0x40] sm:$0xff] }
  0x10   :  { %595 = vmatprep.subr.bf16.mxu0 %v645_v13  ;;  %623 = vmatprep.subr.bf16.mxu1 %v645_v13  ;;  %v648_v22 = vld [vmem:[%s803_s2 + $0x38] sm:$0xff]   ;;  %v270_v24 = vld [vmem:[%s802_s1 + $0x50] sm:$0xff]  ;;  %v37_v25 = vld [vmem:[%s801_s0 + $0x8] sm:$0xff] }
  0x11   :  { %v271_v23 = vld [vmem:[%s802_s1 + $0x58] sm:$0xff]  ;;  %v42_v29 = vunpack.c.l.s8.bf16 %v37_v25  ;;  %v273_v31 = vld [vmem:[%s802_s1 + $0x68] sm:$0xff]  ;;  %v272_v32 = vld [vmem:[%s802_s1 + $0x60] sm:$0xff]  ;;  %v43_v35 = vunpack.c.h.s8.bf16 %v37_v25 }
  0x12   :  { %329 = vperm.xlu1 %640, %v267_v17   ;;  %324 = vperm.xlu0 %639, %v266_v18   ;;  %v39_v26 = vld [vmem:[%s801_s0 + $0x18] sm:$0xff]  ;;  %v274_v34 = vld [vmem:[%s802_s1 + $0x70] sm:$0xff] }
  0x13   :  { %596 = vmatpush3.bf16.msra.mxu0 %v645_v13  ;;  %631 = vmatpush3.bf16.msra.mxu1 %v645_v13  ;;  %v46_v30 = vunpack.c.l.s8.bf16 %v39_v26  ;;  %v275_v33 = vld [vmem:[%s802_s1 + $0x78] sm:$0xff]  ;;  %v47_v36 = vunpack.c.h.s8.bf16 %v39_v26  ;;  %s674_s1 = smov [#allocation3]  }
  0x14   :  { %597 = vmatprep.subr.bf16.mxu0 %v646_v16  ;;  %624 = vmatprep.subr.bf16.mxu1 %v646_v16  ;;  %s473_s12 = sshll.u32 %s674_s1, 4  ;;  %s474_s12 = int_to_ptr.vmem [resolvable:$true] %s473_s12 }
  0x15   :  { %s649_s13 = scalar_lea.vmem %s474_s12, 1024  ;;  %p654_p1 = scmp.lt.s32.totalorder %s474_s12, %s474_s12 }
  0x16   :  { %339 = vperm.xlu1 %640, %v269_v20   ;;  %334 = vperm.xlu0 %639, %v268_v21   ;;  %p650_p0 = scmp.ne.s32.totalorder %s474_s12, %s649_s13  ;;  %p655_p2 = scmp.lt.s32.totalorder %s649_s13, %s649_s13 }
  0x17   :  { %598 = vmatpush3.bf16.msra.mxu0 %v646_v16  ;;  %632 = vmatpush3.bf16.msra.mxu1 %v646_v16 }
  0x18   :  { %599 = vmatprep.subr.bf16.mxu0 %v647_v19  ;;  %625 = vmatprep.subr.bf16.mxu1 %v647_v19  ;;  %p656_p3 = por %p655_p2, %p654_p1 }
  0x1a   :  { %349 = vperm.xlu1 %640, %v271_v23   ;;  %344 = vperm.xlu0 %639, %v270_v24   ;;  %p657_p4 = pnand %p656_p3, %p650_p0 }
  0x1b   :  { %600 = vmatpush3.bf16.msra.mxu0 %v647_v19  ;;  %633 = vmatpush3.bf16.msra.mxu1 %v647_v19 }
  0x1c   :  { %601 = vmatprep.subr.bf16.mxu0 %v648_v22  ;;  %626 = vmatprep.subr.bf16.mxu1 %v648_v22 }
  0x1e   :  { %359 = vperm.xlu1 %640, %v273_v31   ;;  %354 = vperm.xlu0 %639, %v272_v32  }
  0x1f   :  { %602 = vmatpush3.bf16.msra.mxu0 %v648_v22  ;;  %634 = vmatpush3.bf16.msra.mxu1 %v648_v22 }
  0x22   :  { %604 = vmatmul.mubr.bf16.vlgmr.msra.gmra.mrb[0].mxu0 %v41_v27  ;;  %612 = vmatmul.mubr.bf16.vlgmr.msra.gmra.mrb[0].mxu1 %v45_v28 }
  0x23   :  { %607 = vmatprep.mubr.bf16.mxu0 %v42_v29  ;;  %615 = vmatprep.mubr.bf16.mxu1 %v46_v30 }
  0x24   :  { %369 = vperm.xlu1 %640, %v275_v33   ;;  %364 = vperm.xlu0 %639, %v274_v34  }
  0x2a   :  { %608 = vmatmul.mubr.bf16.gmra.mrb[4].mxu0 %v43_v35  ;;  %616 = vmatmul.mubr.bf16.gmra.mrb[4].mxu1 %v47_v36 }
  0x84   :  { %v305_v37 = vpop.permute.xlu1 %304  ;;  %v295_v38 = vpop.permute.xlu0 %294 }
  0x88   :  { %v310_v39 = vpop.permute.xlu1 %309  ;;  %v300_v40 = vpop.permute.xlu0 %299 }
  0x8d   :  { %v320_v41 = vpop.permute.xlu1 %319  ;;  %v315_v42 = vpop.permute.xlu0 %314 }
  0x91   :  { %v330_v43 = vpop.permute.xlu1 %329  ;;  %v325_v44 = vpop.permute.xlu0 %324 }
  0x95   :  { %v340_v45 = vpop.permute.xlu1 %339  ;;  %v335_v46 = vpop.permute.xlu0 %334 }
  0x99   :  { %v350_v47 = vpop.permute.xlu1 %349  ;;  %v345_v48 = vpop.permute.xlu0 %344 }
  0x9d   :  { %v360_v49 = vpop.permute.xlu1 %359  ;;  %v355_v50 = vpop.permute.xlu0 %354 }
  0xa3   :  { %v370_v7 = vpop.permute.xlu1 %369  ;;  %v365_v8 = vpop.permute.xlu0 %364 }
  0xf5   :  { %v605_v51 = vpop.f32.mrb[0].mxu0  ;;  %v613_v52 = vpop.f32.mrb[0].mxu1 }
  0xf6   :  { %v162_v53 = vpop.f32.mrb[1].mxu0  ;;  %v194_v54 = vpop.f32.mrb[1].mxu1  ;;  %v374_v57 = vmul.f32 %v605_v51, %v305_v37  ;;  %v382_v58 = vmul.f32 %v613_v52, %v345_v48 }
  0xf7   :  { %v606_v55 = vpop.f32.mrb[2].mxu0  ;;  %v614_v56 = vpop.f32.mrb[2].mxu1  ;;  %v372_v63 = vmul.f32 %v295_v38, %v162_v53  ;;  %v380_v0 = vmul.f32 %v335_v46, %v194_v54 }
  0xf8   :  { %v375_v59 = vmul.f32 %v606_v55, %v310_v39  ;;  %v383_v60 = vmul.f32 %v614_v56, %v350_v47  ;;  %v165_v61 = vpop.f32.mrb[3].mxu0  ;;  %v197_v62 = vpop.f32.mrb[3].mxu1 }
  0xf9   :  { %v373_v1 = vmul.f32 %v300_v40, %v165_v61  ;;  %v381_v2 = vmul.f32 %v340_v45, %v197_v62 }
  0xfa   :  { %v532_v3 = vpack.c.bf16 %v375_v59, %v374_v57  ;;  %v552_v4 = vpack.c.bf16 %v383_v60, %v382_v58 }
  0xfb   :  { %v527_v5 = vpack.c.bf16 %v373_v1, %v372_v63  ;;  %v547_v6 = vpack.c.bf16 %v381_v2, %v380_v0 }
  0xfc   :  { %564 = vst [vmem:[#allocation3 + $0x8] sm:$0xff] %v532_v3   ;;  %568 = vst [vmem:[#allocation3 + $0x28] sm:$0xff] %v552_v4  }
  0xfd   :  { %528 = vst [vmem:[#allocation3] sm:$0xff] %v527_v5   ;;  %567 = vst [vmem:[#allocation3 + $0x20] sm:$0xff] %v547_v6   ;;  %v609_v9 = vpop.f32.mrb[4].mxu0  ;;  %v617_v10 = vpop.f32.mrb[4].mxu1 }
  0xfe   :  { %v178_v11 = vpop.f32.mrb[5].mxu0  ;;  %v210_v12 = vpop.f32.mrb[5].mxu1  ;;  %v378_v15 = vmul.f32 %v609_v9, %v325_v44  ;;  %v386_v16 = vmul.f32 %v617_v10, %v365_v8 }
  0xff   :  { %v610_v13 = vpop.f32.mrb[6].mxu0  ;;  %v618_v14 = vpop.f32.mrb[6].mxu1  ;;  %v376_v21 = vmul.f32 %v315_v42, %v178_v11  ;;  %v384_v22 = vmul.f32 %v355_v50, %v210_v12 }
 0x100   :  { %v379_v17 = vmul.f32 %v610_v13, %v330_v43  ;;  %v387_v18 = vmul.f32 %v618_v14, %v370_v7  ;;  %v181_v19 = vpop.f32.mrb[7].mxu0  ;;  %v213_v20 = vpop.f32.mrb[7].mxu1 }
 0x101   :  { %v377_v23 = vmul.f32 %v320_v41, %v181_v19  ;;  %v385_v24 = vmul.f32 %v360_v49, %v213_v20 }
 0x102   :  { %v542_v25 = vpack.c.bf16 %v379_v17, %v378_v15  ;;  %v562_v26 = vpack.c.bf16 %v387_v18, %v386_v16 }
 0x103   :  { %v537_v27 = vpack.c.bf16 %v377_v23, %v376_v21  ;;  %v557_v28 = vpack.c.bf16 %v385_v24, %v384_v22 }
 0x104   :  { %566 = vst [vmem:[#allocation3 + $0x18] sm:$0xff] %v542_v25   ;;  %570 = vst [vmem:[#allocation3 + $0x38] sm:$0xff] %v562_v26  }
 0x105   :  { %565 = vst [vmem:[#allocation3 + $0x10] sm:$0xff] %v537_v27   ;;  %569 = vst [vmem:[#allocation3 + $0x30] sm:$0xff] %v557_v28  }
 0x106   :  { %660 = shalt.err (!%p657_p4)
}
 0x107   :  { %s661_s16 = scalar_lea.hbm %s804_s3, 1024 }
 0x108   :  { %p662_p5 = scmp.ne.s32.totalorder %s804_s3, %s661_s16  ;;  %p665_p6 = scmp.lt.u32.totalorder %s661_s16, %s804_s3 }
 0x10a   :  { %p667_p7 = pnand %p665_p6, %p662_p5 }
 0x10c   :  { %670 = shalt.err (!%p667_p7)
}
 0x10d   :  { %s675_s21 = smov 64   ;;  %s676_s22 = smov 4  }
 0x10e   :  { %479 = dma.vmem_to_hbm [thread:$0]  %s474_s12, 1024, %s804_s3, [#allocation4], %s675_s21, %s675_s21, %s676_s22  }
 0x10f   :  { %671 = dma.done.wait [#allocation4], 1024  }
 0x110   :  { %672 = vsyncadd [#allocation4], 4294966272 }
 0x111   :  { %483 = vsyncpa [#allocation4], 1 }

</bundles_post_ra>
